<compile_context>
chip_gen: v7x
topology: tpu7x:2x2x1
jax: 0.10.0
libtpu: 0.0.40
codegen_flags: <defaults>
</compile_context>

<pallas_src>
import functools
import math

import jax
import jax.numpy as jnp
from jax import lax
from jax.experimental import pallas as pl
from jax.experimental.pallas import tpu as pltpu

# Above every generation's scoped default (16/32 MiB), at/below v7x's 64 MiB physical.
# Actual per-step footprints here are a few MiB, so this is just pipelining headroom.
_VMEM_LIMIT_BYTES = 64 * 1024 * 1024


def _pick_tile(n, target, align=8):
    """Largest multiple of `align` <= target that divides n exactly, else n (full dim)."""
    if n <= target:
        return n
    t = (target // align) * align
    while t >= align:
        if n % t == 0:
            return t
        t -= align
    return n


# ------------------------------- linear kernel ------------------------------- #
def _linear_kernel(x_ref, w_ref, b_ref, o_ref, acc_ref, *, compute_dtype):
    kk = pl.program_id(2)

    @pl.when(kk == 0)
    def _():
        acc_ref[...] = jnp.zeros_like(acc_ref)

    acc_ref[...] += jnp.dot(x_ref[...].astype(compute_dtype),
                            w_ref[...].astype(compute_dtype),
                            preferred_element_type=jnp.float32)

    @pl.when(kk == pl.num_programs(2) - 1)
    def _():
        o_ref[...] = (acc_ref[...] + b_ref[...]).astype(o_ref.dtype)


def pallas_linear(x, w, b, *, compute_dtype=jnp.float32, out_dtype=None,
                  tm=256, tn=256, tk=512):
    """x:(M,Din) @ w:(Din,Dout) + b:(Dout,) -> (M,Dout); tiled over (M, Dout, K)."""
    M, Din = x.shape
    Dout = w.shape[1]
    out_dtype = x.dtype if out_dtype is None else out_dtype

    tm = min(tm, M)
    tn = min(tn, Dout)
    # K tile must divide Din exactly (zero-padded K would pollute the accumulator)
    # and be 128-aligned for lane-dense x tiles.
    tk = _pick_tile(Din, tk, align=128)

    gm, gn, gk = pl.cdiv(M, tm), pl.cdiv(Dout, tn), Din // tk

    # Resident-operand heuristic: the faster-varying (M, Dout) grid axis restreams one
    # operand; keep the larger of X (M*Din bytes) and W (Din*Dout bytes) resident.
    swap = (Din * Dout) > (M * Din)
    if swap:   # W is the big operand: W column-panel resident, X restreamed.
        grid = (gn, gm, gk)
        x_map = lambda j, i, k: (i, k)
        w_map = lambda j, i, k: (k, j)
        b_map = lambda j, i, k: (0, j)
        o_map = lambda j, i, k: (i, j)
    else:      # X is the big operand: X row-panel resident, W restreamed.
        grid = (gm, gn, gk)
        x_map = lambda i, j, k: (i, k)
        w_map = lambda i, j, k: (k, j)
        b_map = lambda i, j, k: (0, j)
        o_map = lambda i, j, k: (i, j)

    kernel = functools.partial(_linear_kernel, compute_dtype=compute_dtype)
    return pl.pallas_call(
        kernel,
        out_shape=jax.ShapeDtypeStruct((M, Dout), out_dtype),
        grid_spec=pltpu.PrefetchScalarGridSpec(
            num_scalar_prefetch=0,
            grid=grid,
            in_specs=[
                pl.BlockSpec((tm, tk), x_map),
                pl.BlockSpec((tk, tn), w_map),
                pl.BlockSpec((1, tn), b_map),
            ],
            out_specs=pl.BlockSpec((tm, tn), o_map),
            scratch_shapes=[pltpu.VMEM((tm, tn), jnp.float32)],
        ),
        compiler_params=pltpu.CompilerParams(
            dimension_semantics=("parallel", "parallel", "arbitrary"),
            vmem_limit_bytes=_VMEM_LIMIT_BYTES,
        ),
    )(x, w, b.reshape(1, Dout))


# ----------------------------- attention kernels ----------------------------- #
def _attention_heads(q_all, k_all, v_all, attn_ref, *, h, d_k, d_v, compute_dtype):
    # q_all: (tq, h*d_k)   (1/sqrt(d_k) already folded into the Q projection)
    # k_all: (nk, h*d_k), v_all: (nk, h*d_v); attn_ref: (tq, h*d_v) f32 VMEM scratch.
    # TODO(synk): for real configs (d_k/d_v >= 64, long nq/nk) move heads onto a grid axis
    #             with a (b, h, n, d) layout and add a flash-style nk axis; per-head
    #             sub-128 lane slices and whole-seq K/V blocks are fine only at small shapes.
    for i in range(h):  # static unroll over heads
        q = q_all[:, i * d_k:(i + 1) * d_k].astype(compute_dtype)
        kh = k_all[:, i * d_k:(i + 1) * d_k].astype(compute_dtype)
        vh = v_all[:, i * d_v:(i + 1) * d_v].astype(compute_dtype)

        # QK^T: contract last dims directly (no k.T relayout); f32 scores.
        s = lax.dot_general(q, kh, (((1,), (1,)), ((), ())),
                            preferred_element_type=jnp.float32)        # (tq, nk)
        m = jnp.max(s, axis=-1, keepdims=True)
        p = jnp.exp(s - m)
        l = jnp.sum(p, axis=-1, keepdims=True)                         # (tq, 1)

        o = jnp.dot(p.astype(compute_dtype), vh,
                    preferred_element_type=jnp.float32)                # (tq, d_v)
        # Exact normalization of the small (tq, d_v) tile; static-slice store into the
        # VMEM slab (no concat, no h live f32 tiles held in vregs).
        attn_ref[:, i * d_v:(i + 1) * d_v] = o / l


def _fc_o_epilogue(attn_ref, wo_ref, bo_ref, o_ref, compute_dtype):
    # Fused output projection: dot the in-VMEM (tq, h*d_v) slab with the resident wo.
    out = jnp.dot(attn_ref[...].astype(compute_dtype),
                  wo_ref[...].astype(compute_dtype),
                  preferred_element_type=jnp.float32)
    o_ref[0] = (out + bo_ref[...]).astype(o_ref.dtype)


def _self_attention_kernel(qkv_ref, wo_ref, bo_ref, o_ref, attn_ref, *,
                           h, d_k, d_v, tq, compute_dtype):
    # qkv_ref: (1, seq, h*d_k | h*d_k | h*d_v) fused projection block for one batch
    # element, resident across the nq-tile grid axis (no XLA split of the qkv output).
    hk = h * d_k
    t = pl.program_id(1)
    q0 = pl.multiple_of(t * tq, tq)
    qkv_b = qkv_ref.at[0]                     # (seq, width) VMEM view
    q_rows = qkv_b[pl.ds(q0, tq), :]          # q tile rows
    kv_rows = qkv_b[...]                      # whole-sequence rows for K/V
    _attention_heads(q_rows[:, :hk], kv_rows[:, hk:2 * hk], kv_rows[:, 2 * hk:],
                     attn_ref, h=h, d_k=d_k, d_v=d_v, compute_dtype=compute_dtype)
    _fc_o_epilogue(attn_ref, wo_ref, bo_ref, o_ref, compute_dtype)


def _cross_attention_kernel(q_ref, k_ref, v_ref, wo_ref, bo_ref, o_ref, attn_ref, *,
                            h, d_k, d_v, compute_dtype):
    _attention_heads(q_ref[0], k_ref[0], v_ref[0], attn_ref,
                     h=h, d_k=d_k, d_v=d_v, compute_dtype=compute_dtype)
    _fc_o_epilogue(attn_ref, wo_ref, bo_ref, o_ref, compute_dtype)


def pallas_self_attention(qkv, wo, bo, *, h, d_k, d_v, out_dtype, compute_dtype, tq=256):
    """qkv: (b, seq, 2*h*d_k + h*d_v) fused projections -> (b, seq, d_model) (incl. fc_o)."""
    b_s, seq, width = qkv.shape
    d_model = wo.shape[1]
    tq = _pick_tile(seq, tq)
    kernel = functools.partial(_self_attention_kernel, h=h, d_k=d_k, d_v=d_v,
                               tq=tq, compute_dtype=compute_dtype)
    return pl.pallas_call(
        kernel,
        out_shape=jax.ShapeDtypeStruct((b_s, seq, d_model), out_dtype),
        grid_spec=pltpu.PrefetchScalarGridSpec(
            num_scalar_prefetch=0,
            grid=(b_s, seq // tq),
            in_specs=[
                pl.BlockSpec((1, seq, width), lambda b, t: (b, 0, 0)),    # qkv, resident over t
                pl.BlockSpec((h * d_v, d_model), lambda b, t: (0, 0)),    # wo, resident
                pl.BlockSpec((1, d_model), lambda b, t: (0, 0)),          # bo, resident
            ],
            out_specs=pl.BlockSpec((1, tq, d_model), lambda b, t: (b, t, 0)),
            scratch_shapes=[pltpu.VMEM((tq, h * d_v), jnp.float32)],
        ),
        compiler_params=pltpu.CompilerParams(
            dimension_semantics=("parallel", "parallel"),
            vmem_limit_bytes=_VMEM_LIMIT_BYTES,
        ),
    )(qkv, wo, bo.reshape(1, d_model))


def pallas_cross_attention(q, k, v, wo, bo, *, h, d_k, d_v, out_dtype, compute_dtype, tq=256):
    """q:(b,nq,h*d_k), k:(b,nk,h*d_k), v:(b,nk,h*d_v) -> (b, nq, d_model) (incl. fc_o)."""
    b_s, nq, _ = q.shape
    nk = k.shape[1]
    d_model = wo.shape[1]
    tq = _pick_tile(nq, tq)
    kernel = functools.partial(_cross_attention_kernel, h=h, d_k=d_k, d_v=d_v,
                               compute_dtype=compute_dtype)
    return pl.pallas_call(
        kernel,
        out_shape=jax.ShapeDtypeStruct((b_s, nq, d_model), out_dtype),
        grid_spec=pltpu.PrefetchScalarGridSpec(
            num_scalar_prefetch=0,
            grid=(b_s, nq // tq),
            in_specs=[
                pl.BlockSpec((1, tq, h * d_k), lambda b, t: (b, t, 0)),
                pl.BlockSpec((1, nk, h * d_k), lambda b, t: (b, 0, 0)),   # resident over t
                pl.BlockSpec((1, nk, h * d_v), lambda b, t: (b, 0, 0)),   # resident over t
                pl.BlockSpec((h * d_v, d_model), lambda b, t: (0, 0)),
                pl.BlockSpec((1, d_model), lambda b, t: (0, 0)),
            ],
            out_specs=pl.BlockSpec((1, tq, d_model), lambda b, t: (b, t, 0)),
            scratch_shapes=[pltpu.VMEM((tq, h * d_v), jnp.float32)],
        ),
        compiler_params=pltpu.CompilerParams(
            dimension_semantics=("parallel", "parallel"),
            vmem_limit_bytes=_VMEM_LIMIT_BYTES,
        ),
    )(q, k, v, wo, bo.reshape(1, d_model))


# -------------------------------- full module -------------------------------- #
def xavier_uniform(key, fan_in, fan_out, dtype=jnp.float32):
    bound = math.sqrt(6.0 / (fan_in + fan_out))
    # stored as (in, out) so forward is x @ W + b (equivalent to torch x @ W.T)
    return jax.random.uniform(key, (fan_in, fan_out), dtype, -bound, bound)


def init_params(key, d_model, d_k, d_v, h):
    ks = jax.random.split(key, 4)
    p = {
        "wq": xavier_uniform(ks[0], d_model, h * d_k),
        "bq": jnp.zeros((h * d_k,), jnp.float32),
        "wk": xavier_uniform(ks[1], d_model, h * d_k),
        "bk": jnp.zeros((h * d_k,), jnp.float32),
        "wv": xavier_uniform(ks[2], d_model, h * d_v),
        "bv": jnp.zeros((h * d_v,), jnp.float32),
        "wo": xavier_uniform(ks[3], h * d_v, d_model),
        "bo": jnp.zeros((d_model,), jnp.float32),
    }
    # 1/sqrt(d_k) folded into the Q projection (exact; removes the in-kernel scale mul).
    scale = 1.0 / math.sqrt(d_k)
    p["wq_s"] = p["wq"] * scale
    p["bq_s"] = p["bq"] * scale
    # Pre-fused QKV projection for the self-attention fast path (one pallas_call,
    # x read from HBM once, lane-dense output).
    p["w_qkv"] = jnp.concatenate([p["wq_s"], p["wk"], p["wv"]], axis=1)
    p["b_qkv"] = jnp.concatenate([p["bq_s"], p["bk"], p["bv"]], axis=0)
    return p


def scaled_dot_product_attention(params, queries, keys, values, d_k, d_v, h,
                                 compute_dtype=jnp.bfloat16):
    """Forward pass of the PyTorch ScaledDotProductAttention module (eval mode)."""
    # TODO(synk): dropout (p=0.1) is eval-mode identity; attention_mask /
    #             attention_weights paths are not implemented.
    b_s, nq, d_model = queries.shape
    nk = keys.shape[1]
    out_dtype = queries.dtype
    act_dtype = out_dtype if compute_dtype == jnp.float32 else compute_dtype

    # TODO(synk): self-attention fast path keys on object identity; equal-valued but
    #             distinct q/k/v arrays take the (correct but slower) cross path.
    if (queries is keys) and (keys is values):
        qkv = pallas_linear(queries.reshape(b_s * nq, d_model),
                            params["w_qkv"], params["b_qkv"],
                            compute_dtype=compute_dtype, out_dtype=act_dtype)
        qkv = qkv.reshape(b_s, nq, 2 * h * d_k + h * d_v)   # metadata-only reshape
        out = pallas_self_attention(qkv, params["wo"], params["bo"],
                                    h=h, d_k=d_k, d_v=d_v,
                                    out_dtype=out_dtype, compute_dtype=compute_dtype)
    else:
        q = pallas_linear(queries.reshape(b_s * nq, d_model), params["wq_s"], params["bq_s"],
                          compute_dtype=compute_dtype, out_dtype=act_dtype
                          ).reshape(b_s, nq, h * d_k)
        k = pallas_linear(keys.reshape(b_s * nk, d_model), params["wk"], params["bk"],
                          compute_dtype=compute_dtype, out_dtype=act_dtype
                          ).reshape(b_s, nk, h * d_k)
        v = pallas_linear(values.reshape(b_s * nk, d_model), params["wv"], params["bv"],
                          compute_dtype=compute_dtype, out_dtype=act_dtype
                          ).reshape(b_s, nk, h * d_v)
        out = pallas_cross_attention(q, k, v, params["wo"], params["bo"],
                                     h=h, d_k=d_k, d_v=d_v,
                                     out_dtype=out_dtype, compute_dtype=compute_dtype)
    return out


# --------------------------------- reference --------------------------------- #
def reference(params, queries, keys, values, d_k, d_v, h):
    b_s, nq, d_model = queries.shape
    nk = keys.shape[1]
    q = (queries @ params["wq"] + params["bq"]).reshape(b_s, nq, h, d_k).transpose(0, 2, 1, 3)
    k = (keys @ params["wk"] + params["bk"]).reshape(b_s, nk, h, d_k).transpose(0, 2, 3, 1)
    v = (values @ params["wv"] + params["bv"]).reshape(b_s, nk, h, d_v).transpose(0, 2, 1, 3)
    att = jnp.matmul(q, k) / math.sqrt(d_k)
    att = jax.nn.softmax(att, axis=-1)
    out = jnp.matmul(att, v).transpose(0, 2, 1, 3).reshape(b_s, nq, h * d_v)
    return out @ params["wo"] + params["bo"]


if __name__ == "__main__":
    d_model, d_k, d_v, h = 32, 16, 16, 4
    b_s, nq, nk = 2, 8, 8

    key = jax.random.PRNGKey(0)
    kp, kq, kk, kv = jax.random.split(key, 4)
    params = init_params(kp, d_model, d_k, d_v, h)

    x = jax.random.normal(kq, (b_s, nq, d_model), jnp.float32)
    keys_in = jax.random.normal(kk, (b_s, nk, d_model), jnp.float32)
    values_in = jax.random.normal(kv, (b_s, nk, d_model), jnp.float32)

    ref_self = reference(params, x, x, x, d_k, d_v, h)
    ref_cross = reference(params, x, keys_in, values_in, d_k, d_v, h)

    # f32 compute path: exact softmax normalization -> tight tolerance.
    out_self = jax.block_until_ready(
        scaled_dot_product_attention(params, x, x, x, d_k, d_v, h,
                                     compute_dtype=jnp.float32))
    out_cross = jax.block_until_ready(
        scaled_dot_product_attention(params, x, keys_in, values_in, d_k, d_v, h,
                                     compute_dtype=jnp.float32))
    assert out_self.shape == (b_s, nq, d_model)
    assert out_cross.shape == (b_s, nq, d_model)
    assert jnp.allclose(out_self, ref_self, atol=2e-3, rtol=2e-3), "self-attn (f32) mismatch"
    assert jnp.allclose(out_cross, ref_cross, atol=2e-3, rtol=2e-3), "cross-attn (f32) mismatch"

    # bf16 MXU-operand path (native MXU rate; f32 accumulate, f32 softmax stats).
    out_self_bf = jax.block_until_ready(
        scaled_dot_product_attention(params, x, x, x, d_k, d_v, h,
                                     compute_dtype=jnp.bfloat16))
    out_cross_bf = jax.block_until_ready(
        scaled_dot_product_attention(params, x, keys_in, values_in, d_k, d_v, h,
                                     compute_dtype=jnp.bfloat16))
    assert jnp.allclose(out_self_bf, ref_self, atol=6e-2, rtol=6e-2), "self-attn (bf16) mismatch"
    assert jnp.allclose(out_cross_bf, ref_cross, atol=6e-2, rtol=6e-2), "cross-attn (bf16) mismatch"

    print("KERNEL_OK")
</pallas_src>

<mosaic_0001>
module attributes {stable_mosaic.version = 11 : i64} {
  func.func @_linear_kernel(%arg0: i32, %arg1: i32, %arg2: i32, %arg3: memref<16x32xf32, #tpu.memory_space<vmem>>, %arg4: memref<32x192xf32, #tpu.memory_space<vmem>>, %arg5: memref<1x192xf32, #tpu.memory_space<vmem>>, %arg6: memref<16x192xf32, #tpu.memory_space<vmem>>, %arg7: memref<16x192xf32, #tpu.memory_space<vmem>>) attributes {dimension_semantics = [#tpu.dimension_semantics<parallel>, #tpu.dimension_semantics<parallel>, #tpu.dimension_semantics<arbitrary>], iteration_bounds = array<i64: 1, 1, 1>, scalar_prefetch = 0 : i64, scratch_operands = 1 : i64, tpu.core_type = #tpu.core_type<tc>, window_params = [{transform_indices = @transform_0, window_bounds = array<i64: 16, 32>}, {transform_indices = @transform_1, window_bounds = array<i64: 32, 192>}, {transform_indices = @transform_2, window_bounds = array<i64: 1, 192>}, {transform_indices = @transform_3, window_bounds = array<i64: 16, 192>}]} {
    %c0_i32 = arith.constant 0 : i32
    %0 = arith.cmpi eq, %arg2, %c0_i32 : i32
    %1 = arith.extui %0 : i1 to i32
    %c0_i32_0 = arith.constant 0 : i32
    %2 = arith.cmpi ne, %1, %c0_i32_0 : i32
    scf.if %2 {
      %cst_10 = arith.constant 0.000000e+00 : f32
      %12 = vector.broadcast %cst_10 : f32 to vector<16x192xf32>
      %c0_11 = arith.constant 0 : index
      %c0_12 = arith.constant 0 : index
      %13 = vector.load %arg7[%c0_11, %c0_12] : memref<16x192xf32, #tpu.memory_space<vmem>>, vector<16x192xf32>
      tpu.vector_store %arg7[%c0_11, %c0_12], %12 {strides = array<i32>} : memref<16x192xf32, #tpu.memory_space<vmem>>, vector<16x192xf32>,
    } else {
    }
    %c0 = arith.constant 0 : index
    %c0_1 = arith.constant 0 : index
    %3 = vector.load %arg7[%c0, %c0_1] : memref<16x192xf32, #tpu.memory_space<vmem>>, vector<16x192xf32>
    %c0_2 = arith.constant 0 : index
    %c0_3 = arith.constant 0 : index
    %4 = vector.load %arg3[%c0_2, %c0_3] : memref<16x32xf32, #tpu.memory_space<vmem>>, vector<16x32xf32>
    %c0_4 = arith.constant 0 : index
    %c0_5 = arith.constant 0 : index
    %5 = vector.load %arg4[%c0_4, %c0_5] : memref<32x192xf32, #tpu.memory_space<vmem>>, vector<32x192xf32>
    %cst = arith.constant dense<0.000000e+00> : vector<16x192xf32>
    %6 = tpu.matmul %4, %5, %cst {dimension_numbers = #tpu.dot_dimension_numbers<[1], [0], [0], [1], [0, 0, 1, 1], [], []>} : vector<16x32xf32>, vector<32x192xf32>, vector<16x192xf32> -> vector<16x192xf32>
    %7 = arith.addf %3, %6 : vector<16x192xf32>
    %c0_6 = arith.constant 0 : index
    %c0_7 = arith.constant 0 : index
    %8 = vector.load %arg7[%c0_6, %c0_7] : memref<16x192xf32, #tpu.memory_space<vmem>>, vector<16x192xf32>
    tpu.vector_store %arg7[%c0_6, %c0_7], %7 {strides = array<i32>} : memref<16x192xf32, #tpu.memory_space<vmem>>, vector<16x192xf32>,
    %c0_i32_8 = arith.constant 0 : i32
    %9 = arith.cmpi eq, %arg2, %c0_i32_8 : i32
    %10 = arith.extui %9 : i1 to i32
    %c0_i32_9 = arith.constant 0 : i32
    %11 = arith.cmpi ne, %10, %c0_i32_9 : i32
    scf.if %11 {
      %c0_10 = arith.constant 0 : index
      %c0_11 = arith.constant 0 : index
      %12 = vector.load %arg7[%c0_10, %c0_11] : memref<16x192xf32, #tpu.memory_space<vmem>>, vector<16x192xf32>
      %c0_12 = arith.constant 0 : index
      %c0_13 = arith.constant 0 : index
      %13 = vector.load %arg5[%c0_12, %c0_13] : memref<1x192xf32, #tpu.memory_space<vmem>>, vector<1x192xf32>
      %14 = vector.broadcast %13 : vector<1x192xf32> to vector<16x192xf32>
      %15 = arith.addf %12, %14 : vector<16x192xf32>
      %c0_14 = arith.constant 0 : index
      %c0_15 = arith.constant 0 : index
      %16 = vector.load %arg6[%c0_14, %c0_15] : memref<16x192xf32, #tpu.memory_space<vmem>>, vector<16x192xf32>
      tpu.vector_store %arg6[%c0_14, %c0_15], %15 {strides = array<i32>} : memref<16x192xf32, #tpu.memory_space<vmem>>, vector<16x192xf32>,
    } else {
    }
    return
  }
  func.func @transform_0(%arg0: i32, %arg1: i32, %arg2: i32) -> (i32, i32) {
    %c0_i32 = arith.constant 0 : i32
    return %arg1, %arg2 : i32, i32
  }
  func.func @transform_1(%arg0: i32, %arg1: i32, %arg2: i32) -> (i32, i32) {
    %c0_i32 = arith.constant 0 : i32
    return %arg2, %arg0 : i32, i32
  }
  func.func @transform_2(%arg0: i32, %arg1: i32, %arg2: i32) -> (i32, i32) {
    %c0_i32 = arith.constant 0 : i32
    %c0_i32_0 = arith.constant 0 : i32
    return %c0_i32, %arg0 : i32, i32
  }
  func.func @transform_3(%arg0: i32, %arg1: i32, %arg2: i32) -> (i32, i32) {
    %c0_i32 = arith.constant 0 : i32
    return %arg1, %arg0 : i32, i32
  }
}

</mosaic_0001>

<bundles_post_ra>
// kernel: tpu_custom_call.1
= control target key start
LH: loop header
LB: loop body
LE: loop exit
PB: predicated region body
PF: predicated region fallthrough
CT: control target
= control target key end

     0   :  { %8 = vsyncpa [#allocation4], 0  ;;  %s421_s0 = inlined_call_operand.hbm [shape: f32[16,32], index: 0, kind: input, shape index: {}]   ;;  %s422_s1 = inlined_call_operand.hbm [shape: f32[32,192], index: 1, kind: input, shape index: {}]   ;;  %s423_s2 = inlined_call_operand.hbm [shape: f32[1,192], index: 2, kind: input, shape index: {}]   ;;  %s424_s3 = inlined_call_operand.hbm [shape: f32[16,192], index: 3, kind: output, shape index: {}]  }
   0x1   :  { %9 = vsyncpa [#allocation7], 0 }
   0x2   :  { %10 = vsyncpa [#allocation5], 0  ;;  %s332_s12 = smov [#allocation6]   ;;  %s238_s16 = scalar_lea.hbm %s422_s1, 1024 }
   0x3   :  { %s28_s13 = sshll.u32 %s332_s12, 4  ;;  %p239_p0 = scmp.ne.s32.totalorder %s422_s1, %s238_s16  ;;  %s29_s13 = int_to_ptr.vmem [resolvable:$true] %s28_s13 }
   0x4   :  { %p242_p1 = scmp.lt.u32.totalorder %s238_s16, %s422_s1 }
   0x6   :  { %p244_p2 = pnand %p242_p1, %p239_p0 }
   0x8   :  { %247 = shalt.err (!%p244_p2)
}
   0x9   :  { %s248_s21 = scalar_lea.vmem %s29_s13, 1024  ;;  %p253_p4 = scmp.lt.s32.totalorder %s29_s13, %s29_s13 }
   0xa   :  { %p249_p3 = scmp.ne.s32.totalorder %s29_s13, %s248_s21  ;;  %p254_p5 = scmp.lt.s32.totalorder %s248_s21, %s248_s21 }
   0xc   :  { %p255_p6 = por %p254_p5, %p253_p4 }
   0xe   :  { %p256_p7 = pnand %p255_p6, %p249_p3 }
  0x10   :  { %259 = shalt.err (!%p256_p7)
}
  0x11   :  { %s333_s22 = smov 256   ;;  %s334_s23 = smov 16  }
  0x12   :  { %34 = dma.hbm_to_vmem [thread:$0]  %s422_s1, 1024, %s29_s13, [#allocation7], %s333_s22, %s333_s22, %s334_s23  }
  0x13   :  { %s335_s26 = smov [#allocation3]   ;;  %s260_s30 = scalar_lea.hbm %s421_s0, 256 }
  0x14   :  { %s16_s27 = sshll.u32 %s335_s26, 4  ;;  %p261_p8 = scmp.ne.s32.totalorder %s421_s0, %s260_s30  ;;  %s17_s27 = int_to_ptr.vmem [resolvable:$true] %s16_s27 }
  0x15   :  { %p264_p9 = scmp.lt.u32.totalorder %s260_s30, %s421_s0 }
  0x17   :  { %p266_p10 = pnand %p264_p9, %p261_p8 }
  0x19   :  { %269 = shalt.err (!%p266_p10)
}
  0x1a   :  { %s270_s8 = scalar_lea.vmem %s17_s27, 256  ;;  %p275_p12 = scmp.lt.s32.totalorder %s17_s27, %s17_s27 }
  0x1b   :  { %p271_p11 = scmp.ne.s32.totalorder %s17_s27, %s270_s8  ;;  %p276_p13 = scmp.lt.s32.totalorder %s270_s8, %s270_s8 }
  0x1d   :  { %p277_p0 = por %p276_p13, %p275_p12 }
  0x1f   :  { %p278_p1 = pnand %p277_p0, %p271_p11 }
  0x21   :  { %281 = shalt.err (!%p278_p1)
}
  0x22   :  { %s336_s1 = smov 128   ;;  %s337_s9 = smov 8  }
  0x23   :  { %22 = dma.hbm_to_vmem [thread:$0]  %s421_s0, 256, %s17_s27, [#allocation4], %s336_s1, %s336_s1, %s337_s9  }
  0x24   :  { %s338_s12 = smov [#allocation8]   ;;  %s282_s16 = scalar_lea.hbm %s423_s2, 32 }
  0x25   :  { %s41_s13 = sshll.u32 %s338_s12, 4  ;;  %p283_p2 = scmp.ne.s32.totalorder %s423_s2, %s282_s16  ;;  %s42_s13 = int_to_ptr.vmem [resolvable:$true] %s41_s13 }
  0x26   :  { %p286_p3 = scmp.lt.u32.totalorder %s282_s16, %s423_s2 }
  0x28   :  { %p288_p4 = pnand %p286_p3, %p283_p2 }
  0x2a   :  { %291 = shalt.err (!%p288_p4)
}
  0x2b   :  { %s292_s21 = scalar_lea.vmem %s42_s13, 32  ;;  %p297_p6 = scmp.lt.s32.totalorder %s42_s13, %s42_s13 }
  0x2c   :  { %p293_p5 = scmp.ne.s32.totalorder %s42_s13, %s292_s21  ;;  %p298_p7 = scmp.lt.s32.totalorder %s292_s21, %s292_s21 }
  0x2e   :  { %p299_p8 = por %p298_p7, %p297_p6 }
  0x30   :  { %p300_p9 = pnand %p299_p8, %p293_p5 }
  0x32   :  { %303 = shalt.err (!%p300_p9)
}
  0x33   :  { %44 = dma.hbm_to_vmem [thread:$0]  %s423_s2, 32, %s42_s13, [#allocation7]  }
  0x34   :  { %326 = dma.done.wait [#allocation4], 256  }
  0x35   :  { %327 = vsyncadd [#allocation4], 4294967040 }
  0x36   :  { %328 = dma.done.wait [#allocation7], 1056  }
  0x37   :  { %329 = vsyncadd [#allocation7], 4294966240  ;;  %v339_v0 = vmov 0.0   ;;  %v70_v1 = vld [vmem:[#allocation6 + $0x8] sm:$0xff]  ;;  %v72_v2 = vld [vmem:[#allocation6 + $0x18] sm:$0xff]  ;;  %vm77_vm0 = vcmask 261120   ;;  %v179_v15 = vlaneseq }
  0x38   :  { %148 = vmatprep.mubr.f32.mxu0 %v339_v0  ;;  %154 = vmatprep.mubr.f32.mxu1 %v339_v0  ;;  %v69_v3 = vld [vmem:[#allocation6] sm:$0xff]  ;;  %v217_v4 = vpack.c.bf16 %v72_v2, %v70_v1  ;;  %v71_v5 = vld [vmem:[#allocation6 + $0x10] sm:$0xff]  ;;  %v74_v6 = vld [vmem:[#allocation6 + $0x28] sm:$0xff]  ;;  %vm59_vm1 = vcmask 523264   ;;  %s340_s2 = smov [#allocation9]  }
  0x39   :  { %v76_v7 = vld [vmem:[#allocation6 + $0x38] sm:$0xff]  ;;  %v219_v8 = vpack.c.bf16 %v71_v5, %v69_v3  ;;  %v73_v10 = vld [vmem:[#allocation6 + $0x20] sm:$0xff]  ;;  %v75_v11 = vld [vmem:[#allocation6 + $0x30] sm:$0xff]  ;;  %60 = vst.msk [vmem:[#allocation2 + $0x8] sm:$0xff] %vm59_vm1, %v339_v0  ;;  %v180_v16 = vshrl.u32 %v179_v15, 7  ;;  %s202_s25 = sshll.u32 %s340_s2, 4  ;;  %s203_s25 = int_to_ptr.vmem [resolvable:$true] %s202_s25 }
  0x3a   :  { %v221_v9 = vpack.c.bf16 %v76_v7, %v74_v6  ;;  %218 = vmatprep.subr.bf16.mxu0 %v217_v4  ;;  %225 = vmatprep.subr.bf16.mxu1 %v217_v4  ;;  %v223_v12 = vpack.c.bf16 %v75_v11, %v73_v10  ;;  %v67_v13 = vld [vmem:[#allocation3] sm:$0xff]  ;;  %v68_v14 = vld [vmem:[#allocation3 + $0x8] sm:$0xff]  ;;  %62 = vst.msk [vmem:[#allocation2 + $0x18] sm:$0xff] %vm59_vm1, %v339_v0  ;;  %v177_v18 = vld [vmem:[#allocation8] sm:$0x3]  ;;  %s304_s26 = scalar_lea.vmem %s203_s25, 512  ;;  %p309_p11 = scmp.lt.s32.totalorder %s203_s25, %s203_s25 }
  0x3b   :  { %220 = vmatpush1.bf16.msra.mxu0 %v219_v8  ;;  %227 = vmatpush1.bf16.msra.mxu1 %v219_v8  ;;  %v181_v17 = vsub.s32 0, %v180_v16  ;;  %v185_v30 = vsub.s32 1, %v180_v16  ;;  %p305_p10 = scmp.ne.s32.totalorder %s203_s25, %s304_s26  ;;  %p310_p12 = scmp.lt.s32.totalorder %s304_s26, %s304_s26 }
  0x3c   :  { %222 = vmatprep.subr.bf16.mxu0 %v221_v9  ;;  %226 = vmatprep.subr.bf16.mxu1 %v221_v9 }
  0x3d   :  { %v182_v21 = vrot.slane %v177_v18, %v181_v17  ;;  %v186_v31 = vrot.slane %v177_v18, %v185_v30  ;;  %p311_p13 = por %p310_p12, %p309_p11 }
  0x3f   :  { %224 = vmatpush1.bf16.msra.mxu0 %v223_v12  ;;  %228 = vmatpush1.bf16.msra.mxu1 %v223_v12  ;;  %p312_p0 = pnand %p311_p13, %p305_p10 }
  0x40   :  { %v64_v19 = vld [vmem:[#allocation2 + $0x8] sm:$0xff] }
  0x41   :  { %v66_v20 = vld [vmem:[#allocation2 + $0x18] sm:$0xff] }
  0x42   :  { %215 = vmatmul.mubr.msk.f32.vlgmr.msra.gmra.mrb[0].mxu0 %vm77_vm0, %v67_v13  ;;  %216 = vmatmul.mubr.msk.f32.vlgmr.msra.gmra.mrb[0].mxu1 %vm77_vm0, %v68_v14 }
 0x115   :  { %v150_v22 = vpop.f32.mrb[0].mxu0  ;;  %v156_v23 = vpop.f32.mrb[0].mxu1 }
 0x116   :  { %v152_v24 = vpop.f32.mrb[1].mxu0  ;;  %v158_v25 = vpop.f32.mrb[1].mxu1  ;;  %v189_v28 = vadd.f32 %v182_v21, %v150_v22  ;;  %v191_v29 = vadd.f32 %v182_v21, %v156_v23 }
 0x117   :  { %v162_v26 = vadd.f32 %v152_v24, %v64_v19  ;;  %v164_v27 = vadd.f32 %v158_v25, %v66_v20 }
 0x118   :  { %193 = vst [vmem:[#allocation9] sm:$0xff] %v189_v28  ;;  %195 = vst [vmem:[#allocation9 + $0x10] sm:$0xff] %v191_v29 }
 0x119   :  { %167 = vst.msk [vmem:[#allocation2 + $0x8] sm:$0xff] %vm59_vm1, %v162_v26  ;;  %169 = vst.msk [vmem:[#allocation2 + $0x18] sm:$0xff] %vm59_vm1, %v164_v27 }
 0x120   :  { %v174_v32 = vld [vmem:[#allocation2 + $0x8] sm:$0xff]  ;;  %v176_v33 = vld [vmem:[#allocation2 + $0x18] sm:$0xff] }
 0x121   :  { %v190_v34 = vadd.f32 %v186_v31, %v174_v32  ;;  %v192_v35 = vadd.f32 %v186_v31, %v176_v33 }
 0x123   :  { %194 = vst.msk [vmem:[#allocation9 + $0x8] sm:$0xff] %vm59_vm1, %v190_v34  ;;  %196 = vst.msk [vmem:[#allocation9 + $0x18] sm:$0xff] %vm59_vm1, %v192_v35 }
 0x124   :  { %315 = shalt.err (!%p312_p0)
}
 0x125   :  { %s316_s29 = scalar_lea.hbm %s424_s3, 512 }
 0x126   :  { %p317_p1 = scmp.ne.s32.totalorder %s424_s3, %s316_s29  ;;  %p320_p2 = scmp.lt.u32.totalorder %s316_s29, %s424_s3 }
 0x128   :  { %p322_p3 = pnand %p320_p2, %p317_p1 }
 0x12a   :  { %325 = shalt.err (!%p322_p3)
}
 0x12b   :  { %208 = dma.vmem_to_hbm [thread:$0]  %s203_s25, 512, %s424_s3, [#allocation5], %s333_s22, %s333_s22, %s334_s23  }
 0x12c   :  { %330 = dma.done.wait [#allocation5], 512  }
 0x12d   :  { %331 = vsyncadd [#allocation5], 4294966784 }
 0x12e   :  { %212 = vsyncpa [#allocation4], 1 }
 0x12f   :  { %213 = vsyncpa [#allocation7], 1 }
 0x130   :  { %214 = vsyncpa [#allocation5], 1 }

</bundles_post_ra>
